<compile_context>
chip_gen: v7x
topology: tpu7x:2x2x1
jax: 0.10.0
libtpu: 0.0.40
codegen_flags: <defaults>
</compile_context>

<pallas_src>
import jax
import jax.numpy as jnp
from jax.experimental import pallas as pl
from jax.experimental.pallas import tpu as pltpu


def _round_up(x, m):
    return ((x + m - 1) // m) * m


_CHUNK = 128  # lane-aligned width of each weight chunk inside the packed slab


# ----------------------------------------------------------------------------
# Fused forward kernel (register-resident: no scratch, single output store)
# ----------------------------------------------------------------------------
def _build_fused_kernel(*, B, T, Tseg, PAD, K, Cp, dils, has_down,
                        w_offs, b_offs):
    L = B * Tseg
    n_blocks = len(dils)

    def kernel(z_ref, wexp_ref, slab_ref, o_ref):
        f32 = jnp.float32

        # ---- first_dense (+bias via ones column) + view + nearest Upsample:
        #      one lane-dense (B, Cp*T) matmul.
        h = jnp.dot(z_ref[...], wexp_ref[...], preferred_element_type=f32)

        # ---- relayout to activation layout (Cp, B*Tseg): channels on
        #      sublanes, per-batch time segments on lanes, PAD zero columns at
        #      the left of every segment (free causal padding).  Value ops
        #      only — zero stores in the prologue.
        zpad = jnp.zeros((Cp, PAD), f32)
        pieces = []
        for b in range(B):
            rows = [h[b:b + 1, c * T:(c + 1) * T] for c in range(Cp)]
            pieces += [zpad, jnp.concatenate(rows, axis=0)]
        cur = jnp.concatenate(pieces, axis=1)                 # (Cp, L)

        # data-column mask: 1.0 on [b*Tseg+PAD, b*Tseg+PAD+T), 0.0 on pads.
        col = jax.lax.broadcasted_iota(jnp.int32, (1, L), 1)
        keep = (col >= PAD) & (col < PAD + T)
        for b in range(1, B):
            lo = b * Tseg + PAD
            keep = keep | ((col >= lo) & (col < lo + T))
        mask = keep.astype(f32)                               # (1, L)

        slab = slab_ref[...]            # all conv weights + biases (one DMA)

        def shift_right(v, s):
            # causally shift the whole multi-segment buffer right by s lanes,
            # filling with zeros (value slice + concat; no VMEM round trip).
            if s == 0:
                return v
            return jnp.concatenate(
                [jnp.zeros((Cp, s), f32), v[:, :L - s]], axis=1)

        def conv(v, wcol, bcol, dil):
            # ONE MXU dot over all batch segments: (Cp, K*Cp) x (K*Cp, L).
            taps = [shift_right(v, (K - 1 - j) * dil) for j in range(K)]
            op = jnp.concatenate(taps, axis=0) if K > 1 else taps[0]
            w = slab[:, wcol:wcol + K * Cp]
            bias = slab[:, bcol:bcol + 1]
            return jnp.dot(w, op, preferred_element_type=f32) + bias

        # ---- TemporalBlocks, fully fused, register-resident
        for i in range(n_blocks):
            dil = dils[i]
            # conv1 -> chomp -> ReLU (dropout = identity); re-zero pad columns
            h1 = jnp.maximum(conv(cur, w_offs[i][0], b_offs[i][0], dil), 0.0)
            h1 = h1 * mask
            # conv2 -> chomp -> ReLU
            h2 = jnp.maximum(conv(h1, w_offs[i][1], b_offs[i][1], dil), 0.0)
            # residual path (identity or fused 1x1 downsample conv)
            if has_down[i]:
                wd = slab[:, w_offs[i][2]:w_offs[i][2] + Cp]
                bd = slab[:, b_offs[i][2]:b_offs[i][2] + 1]
                res = jnp.dot(wd, cur, preferred_element_type=f32) + bd
            else:
                res = cur
            cur = jnp.maximum(h2 + res, 0.0) * mask

        # ---- single lane-dense store; wrapper restores (B, c_out, T) layout
        o_ref[...] = cur

    return kernel


def tcn_decoder_forward(kparams, x, labels):
    """Fused forward: one pallas_call, everything stays in vregs/VMEM."""
    cfg = kparams["config"]
    B = x.shape[0]
    T, Tseg, PAD, K = cfg["T"], cfg["Tseg"], cfg["PAD"], cfg["K"]
    Cp, c_out = cfg["Cp"], cfg["out_channels"]

    # concat(x, labels) + ones column (folds the dense bias into the matmul)
    z_aug = jnp.concatenate(
        [x.astype(jnp.float32), labels.astype(jnp.float32),
         jnp.ones((B, 1), jnp.float32)], axis=1)

    kernel = _build_fused_kernel(
        B=B, T=T, Tseg=Tseg, PAD=PAD, K=K, Cp=Cp, dils=cfg["dils"],
        has_down=cfg["has_down"], w_offs=cfg["w_offs"], b_offs=cfg["b_offs"])

    vmem = pl.BlockSpec(memory_space=pltpu.MemorySpace.VMEM)
    o = pl.pallas_call(
        kernel,
        out_shape=jax.ShapeDtypeStruct((Cp, B * Tseg), jnp.float32),
        in_specs=[vmem, vmem, vmem],
        out_specs=vmem,
    )(z_aug, kparams["wexp"], kparams["slab"])

    # wrapper-side layout plumbing back to (B, out_channels, T)
    o = o.reshape(Cp, B, Tseg)[:c_out, :, PAD:PAD + T]
    return jnp.transpose(o, (1, 0, 2))


# ----------------------------------------------------------------------------
# Parameters: PyTorch-layout init + one-time conversion to kernel layout
# ----------------------------------------------------------------------------
def init_params(key, *, in_channels, out_channels, latent_dim, kernel_size,
                nb_blocks, seq_len, upsamplenum, labels_latent_dim):
    """PyTorch-layout params (Linear: (out,in); Conv1d: (Cout,Cin,K))."""
    d_in = latent_dim + labels_latent_dim
    d_out = in_channels * (seq_len // upsamplenum)
    keys = jax.random.split(key, 2 + nb_blocks * 6)
    ki = iter(range(len(keys)))

    def nrm(k, shape, scale=0.1):
        return (scale * jax.random.normal(keys[k], shape)).astype(jnp.float32)

    params = {"dense_w": nrm(next(ki), (d_out, d_in)),
              "dense_b": nrm(next(ki), (d_out,)),
              "blocks": []}
    for i in range(nb_blocks):
        cin = in_channels if i == 0 else latent_dim
        cout = out_channels if i == nb_blocks - 1 else latent_dim
        bp = {"w1": nrm(next(ki), (cout, cin, kernel_size)),
              "b1": nrm(next(ki), (cout,)),
              "w2": nrm(next(ki), (cout, cout, kernel_size)),
              "b2": nrm(next(ki), (cout,))}
        if cin != cout:  # residual 1x1 downsample conv
            bp["wd"] = nrm(next(ki), (cout, cin, 1))
            bp["bd"] = nrm(next(ki), (cout,))
        else:
            next(ki); next(ki)
        params["blocks"].append(bp)
    return params


def prepare_params(pt_params, *, in_channels, out_channels, latent_dim,
                   kernel_size, dilatation, nb_blocks, seq_len, upsamplenum,
                   labels_latent_dim):
    """One-time conversion; all reshapes/transposes hoisted out of forward."""
    T, u, K = seq_len, upsamplenum, kernel_size
    T0 = seq_len // upsamplenum
    C0 = in_channels
    Cp = _round_up(max(in_channels, latent_dim, out_channels), 8)
    dils = [dilatation ** i for i in range(nb_blocks)]
    PAD = (K - 1) * max(dils)
    Tseg = T + PAD
    d_in = latent_dim + labels_latent_dim
    assert K * Cp <= _CHUNK and Cp <= _CHUNK

    # first_dense + view + Upsample folded into one expanded weight; the dense
    # bias becomes the last row (matched by the ones column appended to z).
    W, bv = pt_params["dense_w"], pt_params["dense_b"]
    wu = jnp.repeat(W.reshape(C0, T0, d_in), u, axis=1)       # (C0, T, d_in)
    wu = jnp.transpose(wu, (2, 0, 1)).reshape(d_in, C0 * T)
    wu = jnp.pad(wu, ((0, 0), (0, (Cp - C0) * T)))
    bu = jnp.repeat(bv.reshape(C0, T0), u, axis=1).reshape(1, C0 * T)
    bu = jnp.pad(bu, ((0, 0), (0, (Cp - C0) * T)))
    wexp = jnp.concatenate([wu, bu], axis=0)                  # (d_in+1, Cp*T)

    def pack_conv(w):
        cout, cin, k = w.shape
        wt = jnp.transpose(w, (0, 2, 1))                      # (cout, k, cin)
        wp = jnp.zeros((Cp, k, Cp), jnp.float32).at[:cout, :, :cin].set(wt)
        return wp.reshape(Cp, k * Cp)

    def pad_chunk(m):
        return jnp.pad(m, ((0, 0), (0, _CHUNK - m.shape[1])))

    w_chunks, bias_cols, w_offs, b_offs, has_down = [], [], [], [], []

    def add_w(m):
        off = len(w_chunks) * _CHUNK
        w_chunks.append(pad_chunk(m))
        return off

    def add_b(bvec, cout):
        idx = len(bias_cols)
        bias_cols.append(
            jnp.zeros((Cp, 1), jnp.float32).at[:cout, 0].set(bvec))
        return idx

    for bp in pt_params["blocks"]:
        wo = [add_w(pack_conv(bp["w1"])), add_w(pack_conv(bp["w2"]))]
        bo = [add_b(bp["b1"], bp["w1"].shape[0]),
              add_b(bp["b2"], bp["w2"].shape[0])]
        if "wd" in bp:
            co, ci, _ = bp["wd"].shape
            wd = jnp.zeros((Cp, Cp), jnp.float32).at[:co, :ci].set(
                bp["wd"][:, :, 0])
            wo.append(add_w(wd))
            bo.append(add_b(bp["bd"], co))
            has_down.append(True)
        else:
            wo.append(-1)
            bo.append(-1)
            has_down.append(False)
        w_offs.append(tuple(wo))
        b_offs.append(tuple(bo))

    bias_base = len(w_chunks) * _CHUNK
    bias_chunk = pad_chunk(jnp.concatenate(bias_cols, axis=1))
    slab = jnp.concatenate(w_chunks + [bias_chunk], axis=1)   # (Cp, nchunks*128)
    b_offs = [tuple((bias_base + i) if i >= 0 else -1 for i in t)
              for t in b_offs]

    return {"wexp": wexp, "slab": slab,
            "config": dict(T=T, Tseg=Tseg, PAD=PAD, K=K, Cp=Cp,
                           out_channels=out_channels, dils=dils,
                           has_down=has_down, w_offs=w_offs, b_offs=b_offs)}


# ----------------------------------------------------------------------------
# Pure-JAX reference (for correctness check)
# ----------------------------------------------------------------------------
def reference_forward(pt_params, x, labels, *, in_channels, seq_len,
                      upsamplenum, dilatation):
    hp = jax.lax.Precision.HIGHEST
    z = jnp.concatenate([x, labels], axis=1)
    h = jnp.dot(z, pt_params["dense_w"].T, precision=hp) + pt_params["dense_b"]
    B = x.shape[0]
    T0 = seq_len // upsamplenum
    h = jnp.repeat(h.reshape(B, in_channels, T0), upsamplenum, axis=-1)

    def causal_conv(xx, w, b, dil):
        cout, cin, K = w.shape
        T = xx.shape[-1]
        pad = (K - 1) * dil
        xp = jnp.pad(xx, ((0, 0), (0, 0), (pad, 0)))
        out = jnp.zeros((xx.shape[0], cout, T), jnp.float32)
        for j in range(K):
            out = out + jnp.einsum("oc,bct->bot", w[:, :, j],
                                   xp[:, :, j * dil:j * dil + T], precision=hp)
        return out + b[None, :, None]

    for i, bp in enumerate(pt_params["blocks"]):
        dil = dilatation ** i
        h1 = jax.nn.relu(causal_conv(h, bp["w1"], bp["b1"], dil))
        h2 = jax.nn.relu(causal_conv(h1, bp["w2"], bp["b2"], dil))
        res = causal_conv(h, bp["wd"], bp["bd"], 1) if "wd" in bp else h
        h = jax.nn.relu(h2 + res)
    return h


# ----------------------------------------------------------------------------
if __name__ == "__main__":
    in_channels = 8
    out_channels = 3
    latent_dim = 8
    kernel_size = 3
    stride = 1           # canonical TCN blocks use stride 1
    dilatation = 2
    dropout = 0.1        # inference mode -> identity
    nb_blocks = 2
    upsamplenum = 2
    seq_len = 16
    labels_latent_dim = 4
    B = 2
    assert stride == 1, "TODO(synk): TCN blocks assume stride=1 (canonical TCN)"

    key = jax.random.PRNGKey(0)
    kx, kl, kp = jax.random.split(key, 3)
    x = jax.random.normal(kx, (B, latent_dim), dtype=jnp.float32)
    labels = jax.random.normal(kl, (B, labels_latent_dim), dtype=jnp.float32)

    pt_params = init_params(
        kp, in_channels=in_channels, out_channels=out_channels,
        latent_dim=latent_dim, kernel_size=kernel_size, nb_blocks=nb_blocks,
        seq_len=seq_len, upsamplenum=upsamplenum,
        labels_latent_dim=labels_latent_dim)
    kparams = prepare_params(
        pt_params, in_channels=in_channels, out_channels=out_channels,
        latent_dim=latent_dim, kernel_size=kernel_size, dilatation=dilatation,
        nb_blocks=nb_blocks, seq_len=seq_len, upsamplenum=upsamplenum,
        labels_latent_dim=labels_latent_dim)

    out = tcn_decoder_forward(kparams, x, labels)
    out = jax.block_until_ready(out)
    assert out.shape == (B, out_channels, seq_len), out.shape
    assert bool(jnp.all(jnp.isfinite(out)))

    ref = reference_forward(pt_params, x, labels, in_channels=in_channels,
                            seq_len=seq_len, upsamplenum=upsamplenum,
                            dilatation=dilatation)
    assert jnp.allclose(out, ref, atol=5e-3, rtol=5e-3), \
        float(jnp.max(jnp.abs(out - ref)))
    print("KERNEL_OK")
</pallas_src>

<mosaic_0001>
module attributes {stable_mosaic.version = 11 : i64} {
  func.func @kernel(%arg0: memref<2x13xf32, #tpu.memory_space<vmem>>, %arg1: memref<13x128xf32, #tpu.memory_space<vmem>>, %arg2: memref<8x768xf32, #tpu.memory_space<vmem>>, %arg3: memref<8x40xf32, #tpu.memory_space<vmem>>) attributes {dimension_semantics = [], scalar_prefetch = 0 : i64, scratch_operands = 0 : i64, tpu.core_type = #tpu.core_type<tc>} {
    %c0 = arith.constant 0 : index
    %c0_0 = arith.constant 0 : index
    %0 = vector.load %arg0[%c0, %c0_0] : memref<2x13xf32, #tpu.memory_space<vmem>>, vector<2x13xf32>
    %c0_1 = arith.constant 0 : index
    %c0_2 = arith.constant 0 : index
    %1 = vector.load %arg1[%c0_1, %c0_2] : memref<13x128xf32, #tpu.memory_space<vmem>>, vector<13x128xf32>
    %cst = arith.constant dense<0.000000e+00> : vector<2x128xf32>
    %2 = tpu.matmul %0, %1, %cst {dimension_numbers = #tpu.dot_dimension_numbers<[1], [0], [0], [1], [0, 0, 1, 1], [], []>} : vector<2x13xf32>, vector<13x128xf32>, vector<2x128xf32> -> vector<2x128xf32>
    %cst_3 = arith.constant 0.000000e+00 : f32
    %3 = vector.broadcast %cst_3 : f32 to vector<8x4xf32>
    %4 = vector.extract_strided_slice %2 {offsets = [0, 0], sizes = [1, 16], strides = [1, 1]} : vector<2x128xf32> to vector<1x16xf32>
    %5 = vector.extract_strided_slice %2 {offsets = [0, 16], sizes = [1, 16], strides = [1, 1]} : vector<2x128xf32> to vector<1x16xf32>
    %6 = vector.extract_strided_slice %2 {offsets = [0, 32], sizes = [1, 16], strides = [1, 1]} : vector<2x128xf32> to vector<1x16xf32>
    %7 = vector.extract_strided_slice %2 {offsets = [0, 48], sizes = [1, 16], strides = [1, 1]} : vector<2x128xf32> to vector<1x16xf32>
    %8 = vector.extract_strided_slice %2 {offsets = [0, 64], sizes = [1, 16], strides = [1, 1]} : vector<2x128xf32> to vector<1x16xf32>
    %9 = vector.extract_strided_slice %2 {offsets = [0, 80], sizes = [1, 16], strides = [1, 1]} : vector<2x128xf32> to vector<1x16xf32>
    %10 = vector.extract_strided_slice %2 {offsets = [0, 96], sizes = [1, 16], strides = [1, 1]} : vector<2x128xf32> to vector<1x16xf32>
    %11 = vector.extract_strided_slice %2 {offsets = [0, 112], sizes = [1, 16], strides = [1, 1]} : vector<2x128xf32> to vector<1x16xf32>
    %12 = tpu.concatenate %4, %5, %6, %7, %8, %9, %10, %11 in 0 : vector<1x16xf32>, vector<1x16xf32>, vector<1x16xf32>, vector<1x16xf32>, vector<1x16xf32>, vector<1x16xf32>, vector<1x16xf32>, vector<1x16xf32> -> vector<8x16xf32>
    %13 = vector.extract_strided_slice %2 {offsets = [1, 0], sizes = [1, 16], strides = [1, 1]} : vector<2x128xf32> to vector<1x16xf32>
    %14 = vector.extract_strided_slice %2 {offsets = [1, 16], sizes = [1, 16], strides = [1, 1]} : vector<2x128xf32> to vector<1x16xf32>
    %15 = vector.extract_strided_slice %2 {offsets = [1, 32], sizes = [1, 16], strides = [1, 1]} : vector<2x128xf32> to vector<1x16xf32>
    %16 = vector.extract_strided_slice %2 {offsets = [1, 48], sizes = [1, 16], strides = [1, 1]} : vector<2x128xf32> to vector<1x16xf32>
    %17 = vector.extract_strided_slice %2 {offsets = [1, 64], sizes = [1, 16], strides = [1, 1]} : vector<2x128xf32> to vector<1x16xf32>
    %18 = vector.extract_strided_slice %2 {offsets = [1, 80], sizes = [1, 16], strides = [1, 1]} : vector<2x128xf32> to vector<1x16xf32>
    %19 = vector.extract_strided_slice %2 {offsets = [1, 96], sizes = [1, 16], strides = [1, 1]} : vector<2x128xf32> to vector<1x16xf32>
    %20 = vector.extract_strided_slice %2 {offsets = [1, 112], sizes = [1, 16], strides = [1, 1]} : vector<2x128xf32> to vector<1x16xf32>
    %21 = tpu.concatenate %13, %14, %15, %16, %17, %18, %19, %20 in 0 : vector<1x16xf32>, vector<1x16xf32>, vector<1x16xf32>, vector<1x16xf32>, vector<1x16xf32>, vector<1x16xf32>, vector<1x16xf32>, vector<1x16xf32> -> vector<8x16xf32>
    %22 = tpu.concatenate %3, %12, %3, %21 in 1 : vector<8x4xf32>, vector<8x16xf32>, vector<8x4xf32>, vector<8x16xf32> -> vector<8x40xf32>
    %23 = tpu.iota {dimensions = array<i32: 1>} : vector<1x40xi32>
    %c4_i32 = arith.constant 4 : i32
    %24 = vector.broadcast %c4_i32 : i32 to vector<1x40xi32>
    %25 = arith.cmpi sge, %23, %24 : vector<1x40xi32>
    %c20_i32 = arith.constant 20 : i32
    %26 = vector.broadcast %c20_i32 : i32 to vector<1x40xi32>
    %27 = arith.cmpi slt, %23, %26 : vector<1x40xi32>
    %28 = arith.andi %25, %27 : vector<1x40xi1>
    %c24_i32 = arith.constant 24 : i32
    %29 = vector.broadcast %c24_i32 : i32 to vector<1x40xi32>
    %30 = arith.cmpi sge, %23, %29 : vector<1x40xi32>
    %c40_i32 = arith.constant 40 : i32
    %31 = vector.broadcast %c40_i32 : i32 to vector<1x40xi32>
    %32 = arith.cmpi slt, %23, %31 : vector<1x40xi32>
    %33 = arith.andi %30, %32 : vector<1x40xi1>
    %34 = arith.ori %28, %33 : vector<1x40xi1>
    %35 = arith.extui %34 : vector<1x40xi1> to vector<1x40xi32>
    %36 = arith.sitofp %35 : vector<1x40xi32> to vector<1x40xf32>
    %c0_4 = arith.constant 0 : index
    %c0_5 = arith.constant 0 : index
    %37 = vector.load %arg2[%c0_4, %c0_5] : memref<8x768xf32, #tpu.memory_space<vmem>>, vector<8x768xf32>
    %cst_6 = arith.constant 0.000000e+00 : f32
    %38 = vector.broadcast %cst_6 : f32 to vector<8x2xf32>
    %39 = vector.extract_strided_slice %22 {offsets = [0, 0], sizes = [8, 38], strides = [1, 1]} : vector<8x40xf32> to vector<8x38xf32>
    %40 = tpu.concatenate %38, %39 in 1 : vector<8x2xf32>, vector<8x38xf32> -> vector<8x40xf32>
    %cst_7 = arith.constant 0.000000e+00 : f32
    %41 = vector.broadcast %cst_7 : f32 to vector<8x1xf32>
    %42 = vector.extract_strided_slice %22 {offsets = [0, 0], sizes = [8, 39], strides = [1, 1]} : vector<8x40xf32> to vector<8x39xf32>
    %43 = tpu.concatenate %41, %42 in 1 : vector<8x1xf32>, vector<8x39xf32> -> vector<8x40xf32>
    %44 = tpu.concatenate %40, %43, %22 in 0 : vector<8x40xf32>, vector<8x40xf32>, vector<8x40xf32> -> vector<24x40xf32>
    %45 = vector.extract_strided_slice %37 {offsets = [0, 0], sizes = [8, 24], strides = [1, 1]} : vector<8x768xf32> to vector<8x24xf32>
    %46 = vector.extract_strided_slice %37 {offsets = [0, 640], sizes = [8, 1], strides = [1, 1]} : vector<8x768xf32> to vector<8x1xf32>
    %cst_8 = arith.constant dense<0.000000e+00> : vector<8x40xf32>
    %47 = tpu.matmul %45, %44, %cst_8 {dimension_numbers = #tpu.dot_dimension_numbers<[1], [0], [0], [1], [0, 0, 1, 1], [], []>} : vector<8x24xf32>, vector<24x40xf32>, vector<8x40xf32> -> vector<8x40xf32>
    %48 = vector.broadcast %46 : vector<8x1xf32> to vector<8x40xf32>
    %49 = arith.addf %47, %48 : vector<8x40xf32>
    %cst_9 = arith.constant 0.000000e+00 : f32
    %50 = vector.broadcast %cst_9 : f32 to vector<8x40xf32>
    %51 = arith.maximumf %49, %50 : vector<8x40xf32>
    %52 = vector.broadcast %36 : vector<1x40xf32> to vector<8x40xf32>
    %53 = arith.mulf %51, %52 : vector<8x40xf32>
    %cst_10 = arith.constant 0.000000e+00 : f32
    %54 = vector.broadcast %cst_10 : f32 to vector<8x2xf32>
    %55 = vector.extract_strided_slice %53 {offsets = [0, 0], sizes = [8, 38], strides = [1, 1]} : vector<8x40xf32> to vector<8x38xf32>
    %56 = tpu.concatenate %54, %55 in 1 : vector<8x2xf32>, vector<8x38xf32> -> vector<8x40xf32>
    %cst_11 = arith.constant 0.000000e+00 : f32
    %57 = vector.broadcast %cst_11 : f32 to vector<8x1xf32>
    %58 = vector.extract_strided_slice %53 {offsets = [0, 0], sizes = [8, 39], strides = [1, 1]} : vector<8x40xf32> to vector<8x39xf32>
    %59 = tpu.concatenate %57, %58 in 1 : vector<8x1xf32>, vector<8x39xf32> -> vector<8x40xf32>
    %60 = tpu.concatenate %56, %59, %53 in 0 : vector<8x40xf32>, vector<8x40xf32>, vector<8x40xf32> -> vector<24x40xf32>
    %61 = vector.extract_strided_slice %37 {offsets = [0, 128], sizes = [8, 24], strides = [1, 1]} : vector<8x768xf32> to vector<8x24xf32>
    %62 = vector.extract_strided_slice %37 {offsets = [0, 641], sizes = [8, 1], strides = [1, 1]} : vector<8x768xf32> to vector<8x1xf32>
    %cst_12 = arith.constant dense<0.000000e+00> : vector<8x40xf32>
    %63 = tpu.matmul %61, %60, %cst_12 {dimension_numbers = #tpu.dot_dimension_numbers<[1], [0], [0], [1], [0, 0, 1, 1], [], []>} : vector<8x24xf32>, vector<24x40xf32>, vector<8x40xf32> -> vector<8x40xf32>
    %64 = vector.broadcast %62 : vector<8x1xf32> to vector<8x40xf32>
    %65 = arith.addf %63, %64 : vector<8x40xf32>
    %cst_13 = arith.constant 0.000000e+00 : f32
    %66 = vector.broadcast %cst_13 : f32 to vector<8x40xf32>
    %67 = arith.maximumf %65, %66 : vector<8x40xf32>
    %68 = arith.addf %67, %22 : vector<8x40xf32>
    %cst_14 = arith.constant 0.000000e+00 : f32
    %69 = vector.broadcast %cst_14 : f32 to vector<8x40xf32>
    %70 = arith.maximumf %68, %69 : vector<8x40xf32>
    %71 = vector.broadcast %36 : vector<1x40xf32> to vector<8x40xf32>
    %72 = arith.mulf %70, %71 : vector<8x40xf32>
    %cst_15 = arith.constant 0.000000e+00 : f32
    %73 = vector.broadcast %cst_15 : f32 to vector<8x4xf32>
    %74 = vector.extract_strided_slice %72 {offsets = [0, 0], sizes = [8, 36], strides = [1, 1]} : vector<8x40xf32> to vector<8x36xf32>
    %75 = tpu.concatenate %73, %74 in 1 : vector<8x4xf32>, vector<8x36xf32> -> vector<8x40xf32>
    %cst_16 = arith.constant 0.000000e+00 : f32
    %76 = vector.broadcast %cst_16 : f32 to vector<8x2xf32>
    %77 = vector.extract_strided_slice %72 {offsets = [0, 0], sizes = [8, 38], strides = [1, 1]} : vector<8x40xf32> to vector<8x38xf32>
    %78 = tpu.concatenate %76, %77 in 1 : vector<8x2xf32>, vector<8x38xf32> -> vector<8x40xf32>
    %79 = tpu.concatenate %75, %78, %72 in 0 : vector<8x40xf32>, vector<8x40xf32>, vector<8x40xf32> -> vector<24x40xf32>
    %80 = vector.extract_strided_slice %37 {offsets = [0, 256], sizes = [8, 24], strides = [1, 1]} : vector<8x768xf32> to vector<8x24xf32>
    %81 = vector.extract_strided_slice %37 {offsets = [0, 642], sizes = [8, 1], strides = [1, 1]} : vector<8x768xf32> to vector<8x1xf32>
    %cst_17 = arith.constant dense<0.000000e+00> : vector<8x40xf32>
    %82 = tpu.matmul %80, %79, %cst_17 {dimension_numbers = #tpu.dot_dimension_numbers<[1], [0], [0], [1], [0, 0, 1, 1], [], []>} : vector<8x24xf32>, vector<24x40xf32>, vector<8x40xf32> -> vector<8x40xf32>
    %83 = vector.broadcast %81 : vector<8x1xf32> to vector<8x40xf32>
    %84 = arith.addf %82, %83 : vector<8x40xf32>
    %cst_18 = arith.constant 0.000000e+00 : f32
    %85 = vector.broadcast %cst_18 : f32 to vector<8x40xf32>
    %86 = arith.maximumf %84, %85 : vector<8x40xf32>
    %87 = vector.broadcast %36 : vector<1x40xf32> to vector<8x40xf32>
    %88 = arith.mulf %86, %87 : vector<8x40xf32>
    %cst_19 = arith.constant 0.000000e+00 : f32
    %89 = vector.broadcast %cst_19 : f32 to vector<8x4xf32>
    %90 = vector.extract_strided_slice %88 {offsets = [0, 0], sizes = [8, 36], strides = [1, 1]} : vector<8x40xf32> to vector<8x36xf32>
    %91 = tpu.concatenate %89, %90 in 1 : vector<8x4xf32>, vector<8x36xf32> -> vector<8x40xf32>
    %cst_20 = arith.constant 0.000000e+00 : f32
    %92 = vector.broadcast %cst_20 : f32 to vector<8x2xf32>
    %93 = vector.extract_strided_slice %88 {offsets = [0, 0], sizes = [8, 38], strides = [1, 1]} : vector<8x40xf32> to vector<8x38xf32>
    %94 = tpu.concatenate %92, %93 in 1 : vector<8x2xf32>, vector<8x38xf32> -> vector<8x40xf32>
    %95 = tpu.concatenate %91, %94, %88 in 0 : vector<8x40xf32>, vector<8x40xf32>, vector<8x40xf32> -> vector<24x40xf32>
    %96 = vector.extract_strided_slice %37 {offsets = [0, 384], sizes = [8, 24], strides = [1, 1]} : vector<8x768xf32> to vector<8x24xf32>
    %97 = vector.extract_strided_slice %37 {offsets = [0, 643], sizes = [8, 1], strides = [1, 1]} : vector<8x768xf32> to vector<8x1xf32>
    %cst_21 = arith.constant dense<0.000000e+00> : vector<8x40xf32>
    %98 = tpu.matmul %96, %95, %cst_21 {dimension_numbers = #tpu.dot_dimension_numbers<[1], [0], [0], [1], [0, 0, 1, 1], [], []>} : vector<8x24xf32>, vector<24x40xf32>, vector<8x40xf32> -> vector<8x40xf32>
    %99 = vector.broadcast %97 : vector<8x1xf32> to vector<8x40xf32>
    %100 = arith.addf %98, %99 : vector<8x40xf32>
    %cst_22 = arith.constant 0.000000e+00 : f32
    %101 = vector.broadcast %cst_22 : f32 to vector<8x40xf32>
    %102 = arith.maximumf %100, %101 : vector<8x40xf32>
    %103 = vector.extract_strided_slice %37 {offsets = [0, 512], sizes = [8, 8], strides = [1, 1]} : vector<8x768xf32> to vector<8x8xf32>
    %104 = vector.extract_strided_slice %37 {offsets = [0, 644], sizes = [8, 1], strides = [1, 1]} : vector<8x768xf32> to vector<8x1xf32>
    %cst_23 = arith.constant dense<0.000000e+00> : vector<8x40xf32>
    %105 = tpu.matmul %103, %72, %cst_23 {dimension_numbers = #tpu.dot_dimension_numbers<[1], [0], [0], [1], [0, 0, 1, 1], [], []>} : vector<8x8xf32>, vector<8x40xf32>, vector<8x40xf32> -> vector<8x40xf32>
    %106 = vector.broadcast %104 : vector<8x1xf32> to vector<8x40xf32>
    %107 = arith.addf %105, %106 : vector<8x40xf32>
    %108 = arith.addf %102, %107 : vector<8x40xf32>
    %cst_24 = arith.constant 0.000000e+00 : f32
    %109 = vector.broadcast %cst_24 : f32 to vector<8x40xf32>
    %110 = arith.maximumf %108, %109 : vector<8x40xf32>
    %111 = vector.broadcast %36 : vector<1x40xf32> to vector<8x40xf32>
    %112 = arith.mulf %110, %111 : vector<8x40xf32>
    %c0_25 = arith.constant 0 : index
    %c0_26 = arith.constant 0 : index
    %113 = vector.load %arg3[%c0_25, %c0_26] : memref<8x40xf32, #tpu.memory_space<vmem>>, vector<8x40xf32>
    tpu.vector_store %arg3[%c0_25, %c0_26], %112 {strides = array<i32>} : memref<8x40xf32, #tpu.memory_space<vmem>>, vector<8x40xf32>,
    return
  }
}

</mosaic_0001>

<bundles_post_ra>
// kernel: tpu_custom_call.1
= control target key start
LH: loop header
LB: loop body
LE: loop exit
PB: predicated region body
PF: predicated region fallthrough
CT: control target
= control target key end

     0   :  { %8 = vsyncpa [#allocation3], 0  ;;  %s1126_s0 = inlined_call_operand.hbm [shape: f32[2,13], index: 0, kind: input, shape index: {}]   ;;  %s1127_s1 = inlined_call_operand.hbm [shape: f32[13,128], index: 1, kind: input, shape index: {}]   ;;  %s1128_s2 = inlined_call_operand.hbm [shape: f32[8,768], index: 2, kind: input, shape index: {}]   ;;  %s1129_s3 = inlined_call_operand.hbm [shape: f32[8,40], index: 3, kind: output, shape index: {}]  }
   0x1   :  { %9 = vsyncpa [#allocation6], 0 }
   0x2   :  { %10 = vsyncpa [#allocation4], 0  ;;  %s929_s12 = smov [#allocation5]   ;;  %s835_s16 = scalar_lea.hbm %s1127_s1, 256 }
   0x3   :  { %s26_s13 = sshll.u32 %s929_s12, 4  ;;  %p836_p0 = scmp.ne.s32.totalorder %s1127_s1, %s835_s16  ;;  %s27_s13 = int_to_ptr.vmem [resolvable:$true] %s26_s13 }
   0x4   :  { %p839_p1 = scmp.lt.u32.totalorder %s835_s16, %s1127_s1 }
   0x6   :  { %p841_p2 = pnand %p839_p1, %p836_p0 }
   0x8   :  { %844 = shalt.err (!%p841_p2)
}
   0x9   :  { %s845_s21 = scalar_lea.vmem %s27_s13, 256  ;;  %p850_p4 = scmp.lt.s32.totalorder %s27_s13, %s27_s13 }
   0xa   :  { %p846_p3 = scmp.ne.s32.totalorder %s27_s13, %s845_s21  ;;  %p851_p5 = scmp.lt.s32.totalorder %s845_s21, %s845_s21 }
   0xc   :  { %p852_p6 = por %p851_p5, %p850_p4 }
   0xe   :  { %p853_p7 = pnand %p852_p6, %p846_p3 }
  0x10   :  { %856 = shalt.err (!%p853_p7)
}
  0x11   :  { %s930_s22 = smov 128   ;;  %s931_s23 = smov 8  }
  0x12   :  { %32 = dma.hbm_to_vmem [thread:$0]  %s1127_s1, 256, %s27_s13, [#allocation6], %s930_s22, %s930_s22, %s931_s23  }
  0x13   :  { %s932_s26 = smov [#allocation2]   ;;  %s933_s28 = smov [#allocation7]  }
  0x14   :  { %s17_s27 = sshll.u32 %s932_s26, 4  ;;  %s39_s29 = sshll.u32 %s933_s28, 4  ;;  %s18_s27 = int_to_ptr.vmem [resolvable:$true] %s17_s27  ;;  %s40_s29 = int_to_ptr.vmem [resolvable:$true] %s39_s29 }
  0x15   :  { %s857_s5 = scalar_lea.hbm %s1126_s0, 32 }
  0x16   :  { %p858_p8 = scmp.ne.s32.totalorder %s1126_s0, %s857_s5  ;;  %p861_p9 = scmp.lt.u32.totalorder %s857_s5, %s1126_s0 }
  0x18   :  { %p863_p10 = pnand %p861_p9, %p858_p8 }
  0x1a   :  { %866 = shalt.err (!%p863_p10)
}
  0x1b   :  { %s867_s1 = scalar_lea.vmem %s18_s27, 32  ;;  %p872_p12 = scmp.lt.s32.totalorder %s18_s27, %s18_s27 }
  0x1c   :  { %p868_p11 = scmp.ne.s32.totalorder %s18_s27, %s867_s1  ;;  %p873_p13 = scmp.lt.s32.totalorder %s867_s1, %s867_s1 }
  0x1e   :  { %p874_p0 = por %p873_p13, %p872_p12 }
  0x20   :  { %p875_p1 = pnand %p874_p0, %p868_p11 }
  0x22   :  { %878 = shalt.err (!%p875_p1)
}
  0x23   :  { %20 = dma.hbm_to_vmem [thread:$0]  %s1126_s0, 32, %s18_s27, [#allocation3]  }
  0x24   :  { %s879_s14 = scalar_lea.hbm %s1128_s2, 768 }
  0x25   :  { %p880_p2 = scmp.ne.s32.totalorder %s1128_s2, %s879_s14  ;;  %p883_p3 = scmp.lt.u32.totalorder %s879_s14, %s1128_s2 }
  0x27   :  { %p885_p4 = pnand %p883_p3, %p880_p2 }
  0x29   :  { %888 = shalt.err (!%p885_p4)
}
  0x2a   :  { %s889_s19 = scalar_lea.vmem %s40_s29, 768  ;;  %p894_p6 = scmp.lt.s32.totalorder %s40_s29, %s40_s29 }
  0x2b   :  { %p890_p5 = scmp.ne.s32.totalorder %s40_s29, %s889_s19  ;;  %p895_p7 = scmp.lt.s32.totalorder %s889_s19, %s889_s19 }
  0x2d   :  { %p896_p8 = por %p895_p7, %p894_p6 }
  0x2f   :  { %p897_p9 = pnand %p896_p8, %p890_p5 }
  0x31   :  { %900 = shalt.err (!%p897_p9)
}
  0x32   :  { %42 = dma.hbm_to_vmem [thread:$0]  %s1128_s2, 768, %s40_s29, [#allocation6]  }
  0x33   :  { %923 = dma.done.wait [#allocation3], 32  }
  0x34   :  { %924 = vsyncadd [#allocation3], 4294967264 }
  0x35   :  { %925 = dma.done.wait [#allocation6], 1024  }
  0x36   :  { %926 = vsyncadd [#allocation6], 4294966272  ;;  %v934_v0 = vmov 0.0|0.0   ;;  %vm935_vm0 = vmmov 0   ;;  %v936_v1 = vmov 0.0   ;;  %vm59_vm1 = vcmask 1044480  }
  0x37   :  { %783 = vmatprep.subr.bf16.mxu0 %v934_v0  ;;  %787 = vmatprep.subr.bf16.mxu1 %v934_v0  ;;  %v53_v2 = vld [vmem:[#allocation5] sm:$0xff]  ;;  %v54_v3 = vld [vmem:[#allocation5 + $0x8] sm:$0x1f]  ;;  %vm937_vm2 = vmmov 1   ;;  %v52_v5 = vld [vmem:[#allocation2] sm:$0x3]  ;;  %v218_v56 = vlaneseq }
  0x38   :  { %739 = vmatprep.mubr.msk.f32.mxu0 %vm935_vm0, %v936_v1  ;;  %748 = vmatprep.mubr.msk.f32.mxu1 %vm935_vm0, %v936_v1  ;;  %vm785_vm3 = vmpackc.low %vm59_vm1, %vm937_vm2  ;;  %v784_v4 = vpack.c.bf16 %v54_v3, %v53_v2  ;;  %vm55_vm4 = vcmask 105472   ;;  %s938_s2 = smov 112   ;;  %s939_s21 = smov 80   ;;  %vm164_vm5 = vcmask 1041408   ;;  %vm162_vm6 = vcmask 1040384   ;;  %v1036_v49 = vld [vmem:[#allocation7 + $0x28] sm:$0xff] }
  0x39   :  { %s940_s22 = smov 96   ;;  %s941_s23 = smov 64   ;;  %vm166_vm7 = vcmask 1042432   ;;  %vm168_vm8 = vcmask 1043456   ;;  %vm171_vm9 = vcmask 1045504   ;;  %vm173_vm10 = vcmask 1046528  }
  0x3a   :  { %786 = vmatpush3.bf16.msk.msra.mxu0 %vm785_vm3, %v784_v4  ;;  %s942_s24 = smov 48   ;;  %s943_s25 = smov 32   ;;  %vm212_vm11 = vcmask 31744   ;;  %vm214_vm12 = vcmask 162816   ;;  %v947_v45 = vmov 0   ;;  %vm216_vm13 = vcmask 195584  }
  0x3b   :  { %791 = vmatprep.subr.bf16.mxu0 %v934_v0  ;;  %s944_s26 = smov 16   ;;  %s945_s27 = smov 4   ;;  %829 = vset.pattern.permute.xlu0 %v947_v45  ;;  %vm239_vm14 = vcmask 15360   ;;  %vm244_vm15 = vcmask 7168   ;;  %v229_v55 = vld [vmem:[#allocation7] sm:$0xff]  ;;  %v219_v57 = vand.u32 127, %v218_v56 }
  0x3c   :  { %s946_s28 = smov 24   ;;  %s948_s29 = smov 1   ;;  %vm1043_vm2 = vmneg %vm244_vm15  ;;  %v950_v3 = vmov 1  }
  0x3d   :  { %740 = vmatmul.mubr.msk.f32.vlgmr.msra.gmra.mrb[0].mxu0 %vm55_vm4, %v52_v5  ;;  %s949_s30 = smov 2   ;;  %vm220_vm4 = vcmp.ge.s32.totalorder %v219_v57, 4  ;;  %s954_s4 = smov [#allocation8]  }
  0x3e   :  { %757 = vmatprep.mubr.msk.f32.mxu0 %vm935_vm0, %v936_v1  ;;  %s680_s5 = sshll.u32 %s954_s4, 4  ;;  %s681_s5 = int_to_ptr.vmem [resolvable:$true] %s680_s5 }
  0x3f   :  { %s901_s6 = scalar_lea.vmem %s681_s5, 128  ;;  %p906_p11 = scmp.lt.s32.totalorder %s681_s5, %s681_s5 }
  0x40   :  { %p902_p10 = scmp.ne.s32.totalorder %s681_s5, %s901_s6  ;;  %p907_p12 = scmp.lt.s32.totalorder %s901_s6, %s901_s6 }
  0x42   :  { %p908_p13 = por %p907_p12, %p906_p11 }
  0x44   :  { %p909_p0 = pnand %p908_p13, %p902_p10 }
 0x110   :  { %v129_v6 = vpop.f32.mrb[0].mxu0 }
 0x111   :  { %176 = vrot.lane.b32.xlu1 %v129_v6, %s938_s2  ;;  %v741_v7 = vpop.f32.mrb[1].mxu0  ;;  %v134_v8 = vrot.slane %v129_v6, 7  ;;  %v142_v9 = vrot.slane %v129_v6, 5  ;;  %v138_v10 = vrot.slane %v129_v6, 6  ;;  %v146_v11 = vrot.slane %v129_v6, 4 }
 0x112   :  { %v150_v12 = vrot.slane %v129_v6, 3  ;;  %v154_v13 = vrot.slane %v129_v6, 2  ;;  %v158_v14 = vrot.slane %v129_v6, 1  ;;  %v230_v7 = vld [vmem:[#allocation7 + $0x8] sm:$0xff] }
 0x113   :  { %135 = vrot.lane.b32.xlu0 %v134_v8, %s938_s2 }
 0x115   :  { %143 = vrot.lane.b32.xlu1 %v142_v9, %s939_s21 }
 0x117   :  { %139 = vrot.lane.b32.xlu0 %v138_v10, %s940_s22 }
 0x119   :  { %179 = vrot.lane.b32.xlu1 %v134_v8, %s940_s22 }
 0x11b   :  { %147 = vrot.lane.b32.xlu0 %v146_v11, %s941_s23 }
 0x11d   :  { %182 = vrot.lane.b32.xlu1 %v138_v10, %s939_s21 }
 0x11f   :  { %151 = vrot.lane.b32.xlu0 %v150_v12, %s942_s24 }
 0x121   :  { %185 = vrot.lane.b32.xlu1 %v142_v9, %s941_s23 }
 0x123   :  { %155 = vrot.lane.b32.xlu0 %v154_v13, %s943_s25 }
 0x125   :  { %188 = vrot.lane.b32.xlu1 %v146_v11, %s942_s24 }
 0x127   :  { %159 = vrot.lane.b32.xlu0 %v158_v14, %s944_s26 }
 0x129   :  { %194 = vrot.lane.b32.xlu1 %v154_v13, %s944_s26 }
 0x12b   :  { %191 = vrot.lane.b32.xlu0 %v150_v12, %s943_s25 }
 0x183   :  { %v177_v15 = vpop.permute.xlu1 %176 }
 0x184   :  { %v197_v31 = vsel %vm162_vm6, %v158_v14, %v177_v15 }
 0x185   :  { %v136_v16 = vpop.permute.xlu0 %135 }
 0x186   :  { %v163_v23 = vsel %vm162_vm6, %v129_v6, %v136_v16  ;;  %vm223_vm6 = vcmp.ge.s32.totalorder %v219_v57, 24  ;;  %v951_v16 = vmov 2  }
 0x187   :  { %v144_v17 = vpop.permute.xlu1 %143 }
 0x189   :  { %v140_v18 = vpop.permute.xlu0 %139 }
 0x18a   :  { %v165_v24 = vsel %vm164_vm5, %v163_v23, %v140_v18 }
 0x18b   :  { %v180_v19 = vpop.permute.xlu1 %179  ;;  %v167_v27 = vsel %vm166_vm7, %v165_v24, %v144_v17 }
 0x18c   :  { %v198_v34 = vsel %vm164_vm5, %v197_v31, %v180_v19  ;;  %vm221_vm5 = vcmp.lt.s32.totalorder %v219_v57, 20 }
 0x18d   :  { %v148_v20 = vpop.permute.xlu0 %147 }
 0x18e   :  { %v169_v28 = vsel %vm168_vm8, %v167_v27, %v148_v20  ;;  %v231_v20 = vld [vmem:[#allocation7 + $0x10] sm:$0xff]  ;;  %v233_v27 = vld [vmem:[#allocation7 + $0x20] sm:$0xff] }
 0x18f   :  { %v183_v21 = vpop.permute.xlu1 %182 }
 0x190   :  { %v199_v36 = vsel %vm166_vm7, %v198_v34, %v183_v21  ;;  %vm224_vm7 = vcmp.lt.s32.totalorder %v219_v57, 40 }
 0x191   :  { %v152_v22 = vpop.permute.xlu0 %151 }
 0x192   :  { %v170_v29 = vsel %vm59_vm1, %v169_v28, %v152_v22  ;;  %v952_v28 = vmov 3  }
 0x193   :  { %v186_v25 = vpop.permute.xlu1 %185 }
 0x194   :  { %v200_v37 = vsel %vm168_vm8, %v199_v36, %v186_v25  ;;  %vm222_vm8 = vmand %vm220_vm4, %vm221_vm5 }
 0x195   :  { %v156_v26 = vpop.permute.xlu0 %155 }
 0x196   :  { %v172_v32 = vsel %vm171_vm9, %v170_v29, %v156_v26  ;;  %v953_v29 = vmov 4  }
 0x197   :  { %v189_v30 = vpop.permute.xlu1 %188  ;;  %833 = vset.pattern.permute.xlu1 %v953_v29 }
 0x198   :  { %v201_v38 = vsel %vm59_vm1, %v200_v37, %v189_v30  ;;  %vm1039_vm1 = vmneg %vm239_vm14 }
 0x199   :  { %v160_v33 = vpop.permute.xlu0 %159  ;;  %vm789_vm3 = vmpackc.low %vm1043_vm2, %vm1039_vm1 }
 0x19a   :  { %v174_v35 = vsel %vm173_vm10, %v172_v32, %v160_v33  ;;  %v232_v33 = vld [vmem:[#allocation7 + $0x18] sm:$0xff] }
 0x19b   :  { %205 = vrot.lane.b32.xlu0 %v174_v35, %s945_s27  ;;  %v195_v40 = vpop.permute.xlu1 %194 }
 0x19d   :  { %v192_v39 = vpop.permute.xlu0 %191 }
 0x19e   :  { %v202_v41 = vsel %vm171_vm9, %v201_v38, %v192_v39  ;;  %vm225_vm9 = vmand %vm223_vm6, %vm224_vm7 }
 0x19f   :  { %v203_v42 = vsel %vm173_vm10, %v202_v41, %v195_v40  ;;  %vm226_vm10 = vmor %vm222_vm8, %vm225_vm9 }
 0x1a0   :  { %209 = vrot.lane.b32.xlu1 %v203_v42, %s946_s28  ;;  %v1062_v62 = vsel %vm226_vm10, 1.0, %v936_v1 }
 0x20d   :  { %v206_v43 = vpop.permute.xlu0 %205 }
 0x20e   :  { %v213_v44 = vsel %vm212_vm11, 0.0, %v206_v43 }
 0x20f   :  { %v215_v46 = vsel %vm214_vm12, %v213_v44, 0.0  ;;  %vm1083_vm12 = vmneg %vm212_vm11  ;;  %vm595_vm11 = vcmask 64512  }
 0x210   :  { %vm797_vm14 = vmpackc.low %vm1039_vm1, %vm1083_vm12 }
 0x212   :  { %v210_v47 = vpop.permute.xlu1 %209 }
 0x213   :  { %v217_v48 = vsel %vm216_vm13, %v215_v46, %v210_v47 }
 0x214   :  { %241 = vrot.lane.b32.xlu1 %v217_v48, %s948_s29  ;;  %236 = vrot.lane.b32.xlu0 %v217_v48, %s949_s30 }
 0x218   :  { %248 = vperm.xlu0 %829, %v1036_v49  }
 0x21c   :  { %830 = vset.pattern.permute.xlu0 %v950_v3 }
 0x21d   :  { %336 = vperm.xlu0 %830, %v1036_v49  }
 0x221   :  { %831 = vset.pattern.permute.xlu0 %v951_v16 }
 0x222   :  { %426 = vperm.xlu0 %831, %v1036_v49  }
 0x226   :  { %832 = vset.pattern.permute.xlu0 %v952_v28 }
 0x227   :  { %514 = vperm.xlu0 %832, %v1036_v49  }
 0x22b   :  { %834 = vset.pattern.permute.xlu0 %v953_v29 }
 0x286   :  { %v242_v52 = vpop.permute.xlu1 %241  ;;  %v237_v53 = vpop.permute.xlu0 %236 }
 0x287   :  { %v788_v54 = vpack.c.bf16 %v242_v52, %v237_v53 }
 0x289   :  { %790 = vmatpush3.bf16.msk.msra.mxu1 %vm789_vm3, %v788_v54 }
 0x28a   :  { %746 = vmatprep.subr.mxu1 %v936_v1 }
 0x28d   :  { %747 = vmatpush3.msra.mxu1 %v217_v48 }
 0x28e   :  { %749 = vmatmul.mubr.msk.f32.vlgmr.msra.gmra.mrb[0].mxu1 %vm216_vm13, %v229_v55  ;;  %795 = vmatprep.subr.bf16.mxu1 %v934_v0 }
 0x28f   :  { %766 = vmatprep.mubr.msk.f32.mxu1 %vm935_vm0, %v936_v1 }
 0x297   :  { %v249_v58 = vpop.permute.xlu0 %248 }
 0x29c   :  { %v337_v8 = vpop.permute.xlu0 %336 }
 0x2a1   :  { %v427_v21 = vpop.permute.xlu0 %426 }
 0x2a6   :  { %v515_v36 = vpop.permute.xlu0 %514 }
 0x361   :  { %v320_v59 = vpop.f32.mrb[0].mxu1 }
 0x362   :  { %v321_v60 = vadd.f32 %v320_v59, %v249_v58  ;;  %v750_v61 = vpop.f32.mrb[1].mxu1 }
 0x364   :  { %v324_v63 = vmax.f32 %v321_v60, 0.0 }
 0x366   :  { %v325_v2 = vmul.f32 %v1062_v62, %v324_v63 }
 0x368   :  { %327 = vrot.lane.b32.xlu1 %v325_v2, %s949_s30 }
 0x36c   :  { %331 = vrot.lane.b32.xlu1 %v325_v2, %s948_s29 }
 0x3da   :  { %v328_v4 = vpop.permute.xlu1 %327 }
 0x3de   :  { %v332_v5 = vpop.permute.xlu1 %331 }
 0x3df   :  { %v792_v6 = vpack.c.bf16 %v332_v5, %v328_v4 }
 0x3e1   :  { %794 = vmatpush3.bf16.msk.msra.mxu0 %vm789_vm3, %v792_v6 }
 0x3e2   :  { %755 = vmatprep.subr.mxu0 %v936_v1 }
 0x3e5   :  { %756 = vmatpush3.msra.mxu0 %v325_v2 }
 0x3e6   :  { %758 = vmatmul.mubr.msk.f32.vlgmr.msra.gmra.mrb[2].mxu0 %vm216_vm13, %v230_v7  ;;  %799 = vmatprep.subr.bf16.mxu0 %v934_v0 }
 0x3e7   :  { %775 = vmatprep.mubr.msk.f32.mxu0 %vm935_vm0, %v936_v1 }
 0x4b9   :  { %v408_v9 = vpop.f32.mrb[2].mxu0 }
 0x4ba   :  { %v409_v10 = vadd.f32 %v408_v9, %v337_v8  ;;  %v759_v11 = vpop.f32.mrb[3].mxu0 }
 0x4bc   :  { %v412_v12 = vmax.f32 %v409_v10, 0.0 }
 0x4be   :  { %v413_v13 = vadd.f32 %v412_v12, %v217_v48 }
 0x4c0   :  { %v414_v14 = vmax.f32 %v413_v13, 0.0 }
 0x4c2   :  { %v415_v15 = vmul.f32 %v1062_v62, %v414_v14 }
 0x4c4   :  { %417 = vrot.lane.b32.xlu1 %v415_v15, %s945_s27 }
 0x4c8   :  { %421 = vrot.lane.b32.xlu1 %v415_v15, %s949_s30 }
 0x536   :  { %v418_v0 = vpop.permute.xlu1 %417 }
 0x53a   :  { %v422_v18 = vpop.permute.xlu1 %421 }
 0x53b   :  { %v796_v19 = vpack.c.bf16 %v422_v18, %v418_v0 }
 0x53d   :  { %798 = vmatpush3.bf16.msk.msra.mxu1 %vm797_vm14, %v796_v19 }
 0x53e   :  { %764 = vmatprep.subr.mxu1 %v936_v1 }
 0x541   :  { %765 = vmatpush3.msra.mxu1 %v415_v15 }
 0x542   :  { %767 = vmatmul.mubr.msk.f32.vlgmr.msra.gmra.mrb[2].mxu1 %vm216_vm13, %v231_v20  ;;  %778 = vmatprep.subr.mxu1 %v936_v1 }
 0x543   :  { %779 = vmatpush3.msra.mxu1 %v415_v15  ;;  %780 = vmatprep.mubr.msk.f32.mxu1 %vm935_vm0, %v936_v1  ;;  %vm672_vm0 = vcmask 326656  }
 0x546   :  { %781 = vmatmul.mubr.msk.f32.vlgmr.msra.gmra.mrb[4].mxu1 %vm595_vm11, %v233_v27 }
 0x615   :  { %v498_v22 = vpop.f32.mrb[2].mxu1 }
 0x616   :  { %v499_v23 = vadd.f32 %v498_v22, %v427_v21  ;;  %v768_v24 = vpop.f32.mrb[3].mxu1 }
 0x618   :  { %v502_v25 = vmax.f32 %v499_v23, 0.0 }
 0x619   :  { %v665_v34 = vpop.f32.mrb[4].mxu1 }
 0x61a   :  { %v503_v26 = vmul.f32 %v1062_v62, %v502_v25  ;;  %v782_v35 = vpop.f32.mrb[5].mxu1 }
 0x61c   :  { %505 = vrot.lane.b32.xlu1 %v503_v26, %s945_s27 }
 0x620   :  { %509 = vrot.lane.b32.xlu1 %v503_v26, %s949_s30 }
 0x624   :  { %592 = vperm.xlu1 %833, %v1036_v49  }
 0x68e   :  { %v506_v30 = vpop.permute.xlu1 %505 }
 0x692   :  { %v510_v31 = vpop.permute.xlu1 %509 }
 0x693   :  { %v800_v32 = vpack.c.bf16 %v510_v31, %v506_v30 }
 0x695   :  { %802 = vmatpush3.bf16.msk.msra.mxu0 %vm797_vm14, %v800_v32 }
 0x696   :  { %773 = vmatprep.subr.mxu0 %v936_v1 }
 0x699   :  { %774 = vmatpush3.msra.mxu0 %v503_v26 }
 0x69a   :  { %776 = vmatmul.mubr.msk.f32.vlgmr.msra.gmra.mrb[4].mxu0 %vm216_vm13, %v232_v33 }
 0x6a3   :  { %v593_v37 = vpop.permute.xlu1 %592 }
 0x6a4   :  { %v666_v41 = vadd.f32 %v665_v34, %v593_v37 }
 0x76d   :  { %v586_v38 = vpop.f32.mrb[4].mxu0 }
 0x76e   :  { %v587_v39 = vadd.f32 %v586_v38, %v515_v36  ;;  %v777_v40 = vpop.f32.mrb[5].mxu0 }
 0x770   :  { %v590_v42 = vmax.f32 %v587_v39, 0.0 }
 0x772   :  { %v669_v43 = vadd.f32 %v666_v41, %v590_v42 }
 0x774   :  { %v670_v44 = vmax.f32 %v669_v43, 0.0 }
 0x776   :  { %v671_v1 = vmul.f32 %v1062_v62, %v670_v44 }
 0x778   :  { %673 = vst.msk [vmem:[#allocation8] sm:$0xff] %vm672_vm0, %v671_v1 }
 0x779   :  { %912 = shalt.err (!%p909_p0)
}
 0x77a   :  { %s913_s9 = scalar_lea.hbm %s1129_s3, 128 }
 0x77b   :  { %p914_p1 = scmp.ne.s32.totalorder %s1129_s3, %s913_s9  ;;  %p917_p2 = scmp.lt.u32.totalorder %s913_s9, %s1129_s3 }
 0x77d   :  { %p919_p3 = pnand %p917_p2, %p914_p1 }
 0x77f   :  { %922 = shalt.err (!%p919_p3)
}
 0x780   :  { %683 = dma.vmem_to_hbm [thread:$0]  %s681_s5, 128, %s1129_s3, [#allocation4]  }
 0x781   :  { %927 = dma.done.wait [#allocation4], 128  }
 0x782   :  { %928 = vsyncadd [#allocation4], 4294967168 }
 0x783   :  { %687 = vsyncpa [#allocation3], 1 }
 0x784   :  { %688 = vsyncpa [#allocation6], 1 }
 0x785   :  { %689 = vsyncpa [#allocation4], 1 }

</bundles_post_ra>
